<compile_context>
chip_gen: v7x
topology: tpu7x:2x2x1
jax: 0.10.0
libtpu: 0.0.40
codegen_flags: <defaults>
</compile_context>

<pallas_src>
import functools
import math

import jax
import jax.numpy as jnp
from jax import lax
from jax.experimental import pallas as pl
from jax.experimental.pallas import tpu as pltpu


_VMEM_LIMIT = 48 * 1024 * 1024
# Keep `support` resident in VMEM inside kernel B if its bf16 footprint is below
# this (leaves plenty of room for adj tiles / Wt / output blocks on all gens).
_SUPPORT_RESIDENT_BYTES = 8 * 1024 * 1024


def _round_up(x, m):
    return (x + m - 1) // m * m


# --------------------------------------------------------------------------
# Kernel A: support = x @ W   (row tiles over N, W resident, no K axis)
# --------------------------------------------------------------------------
def _support_kernel(x_ref, w_ref, o_ref):
    o_ref[...] = jnp.dot(
        x_ref[...], w_ref[...], preferred_element_type=jnp.float32
    ).astype(o_ref.dtype)


# --------------------------------------------------------------------------
# Kernel B (fused): hidden = adj @ support ; adj_recovered = hidden @ W.T
#   - accumulates directly into the resident f32 hidden output block
#   - support either VMEM-resident (sliced per K step) or streamed K tiles
#   - epilogue uses pre-transposed Wt (Hp, Fp): plain MXU dot, no transpose
# --------------------------------------------------------------------------
def _fused_gcn_kernel(adj_ref, sup_ref, wt_ref, hid_ref, rec_ref, *,
                      tk, sup_resident):
    k = pl.program_id(1)

    @pl.when(k == 0)
    def _():
        hid_ref[...] = jnp.zeros_like(hid_ref)

    if sup_resident:
        off = pl.multiple_of(k * tk, tk)
        sup = sup_ref[pl.ds(off, tk), :]
    else:
        sup = sup_ref[...]

    hid_ref[...] += jnp.dot(
        adj_ref[...], sup, preferred_element_type=jnp.float32
    )

    @pl.when(k == pl.num_programs(1) - 1)
    def _():
        rec_ref[...] = jnp.dot(
            hid_ref[...].astype(wt_ref.dtype),
            wt_ref[...],
            preferred_element_type=jnp.float32,
        ).astype(rec_ref.dtype)


@functools.partial(jax.jit, static_argnames=("tm", "tk"))
def gcn_modified_ae_forward(x, adj, weight, *, tm=256, tk=512):
    """Pallas implementation of GCNModifiedAE.forward (eval mode).

    x:      (N, F)  node features
    adj:    (N, N)  dense (normalized) adjacency
    weight: (F, H)  gc1 weight
    returns (adj_recovered (N, F), [hidden (N, H)])
    """
    N, F = x.shape
    Fw, H = weight.shape
    assert Fw == F and adj.shape == (N, N)

    f32 = jnp.float32
    bf16 = jnp.bfloat16

    # Lane-dense padding of feature dims; N padded to 128 only (no lcm blowup).
    Hp = _round_up(H, 128)
    Fp = _round_up(F, 128)
    Np = _round_up(N, 128)

    # Tile selection: tm / tk must divide Np.  gcd against the 128-multiple Np
    # keeps them multiples of 128 (and hence tile-aligned).  Keep >= 2 row
    # tiles so both v7x TensorCores get work on the "parallel" axis.
    tm = max(8, math.gcd(Np, max(8, tm)))
    tk = max(128, math.gcd(Np, max(128, tk)))
    if Np // tm < 2 and Np >= 16:
        tm = max(8, Np // 2)

    def _pad2(a, rows, cols, dtype):
        a = a.astype(dtype)
        if a.shape == (rows, cols):
            return a
        return jnp.zeros((rows, cols), dtype).at[: a.shape[0], : a.shape[1]].set(a)

    # Streamed operands in bf16 (MXU still accumulates in f32); outputs stay f32.
    # NOTE: for adjacency that is static across calls, pre-pad/pre-cast adj once
    # outside the hot path to avoid the extra N^2 read+write here.
    xp = _pad2(x, Np, Fp, bf16)
    adjp = _pad2(adj, Np, Np, bf16)
    wp = _pad2(weight, Fp, Hp, bf16)            # (Fp, Hp) for the prologue
    wtp = _pad2(weight.T, Hp, Fp, bf16)         # pre-transposed, lane-dense

    # --- Kernel A: support = x @ W ----------------------------------------
    grid_a = (Np // tm,)
    support = pl.pallas_call(
        _support_kernel,
        out_shape=jax.ShapeDtypeStruct((Np, Hp), bf16),
        grid_spec=pltpu.PrefetchScalarGridSpec(
            num_scalar_prefetch=0,
            grid=grid_a,
            in_specs=[
                pl.BlockSpec((tm, Fp), lambda i: (i, 0)),
                pl.BlockSpec((Fp, Hp), lambda i: (0, 0),
                             pipeline_mode=pl.Buffered(1)),   # resident weight
            ],
            out_specs=pl.BlockSpec((tm, Hp), lambda i: (i, 0)),
        ),
        compiler_params=pltpu.CompilerParams(
            dimension_semantics=("parallel",),
            vmem_limit_bytes=_VMEM_LIMIT,
        ),
        cost_estimate=pl.CostEstimate(
            flops=2 * Np * Fp * Hp,
            transcendentals=0,
            bytes_accessed=2 * (Np * Fp + Fp * Hp + Np * Hp),
        ),
    )(xp, wp)

    # --- Kernel B: hidden = adj @ support ; rec = hidden @ W.T -------------
    sup_resident = (Np * Hp * 2) <= _SUPPORT_RESIDENT_BYTES
    grid_b = (Np // tm, Np // tk)

    if sup_resident:
        sup_spec = pl.BlockSpec((Np, Hp), lambda i, k: (0, 0),
                                pipeline_mode=pl.Buffered(1))
        sup_bytes = Np * Hp * 2                       # read once
    else:
        sup_spec = pl.BlockSpec((tk, Hp), lambda i, k: (k, 0))
        sup_bytes = grid_b[0] * Np * Hp * 2           # re-streamed per row tile

    kernel_b = functools.partial(
        _fused_gcn_kernel, tk=tk, sup_resident=sup_resident
    )

    hidden_p, rec_p = pl.pallas_call(
        kernel_b,
        out_shape=(
            jax.ShapeDtypeStruct((Np, Hp), f32),
            jax.ShapeDtypeStruct((Np, Fp), f32),
        ),
        grid_spec=pltpu.PrefetchScalarGridSpec(
            num_scalar_prefetch=0,
            grid=grid_b,
            in_specs=[
                pl.BlockSpec((tm, tk), lambda i, k: (i, k)),      # adj tile
                sup_spec,                                         # support
                pl.BlockSpec((Hp, Fp), lambda i, k: (0, 0),       # W.T resident
                             pipeline_mode=pl.Buffered(1)),
            ],
            out_specs=(
                pl.BlockSpec((tm, Hp), lambda i, k: (i, 0)),      # hidden (acc)
                pl.BlockSpec((tm, Fp), lambda i, k: (i, 0)),      # adj_recovered
            ),
        ),
        compiler_params=pltpu.CompilerParams(
            dimension_semantics=("parallel", "arbitrary"),
            vmem_limit_bytes=_VMEM_LIMIT,
        ),
        cost_estimate=pl.CostEstimate(
            flops=2 * Np * Np * Hp + 2 * Np * Hp * Fp,
            transcendentals=0,
            bytes_accessed=(2 * Np * Np          # adj read once (bf16)
                            + sup_bytes          # support
                            + 2 * Hp * Fp        # Wt read once (bf16)
                            + 4 * Np * Hp        # hidden written (f32)
                            + 4 * Np * Fp),      # adj_recovered written (f32)
        ),
    )(adjp, support, wtp)

    hidden = hidden_p[:N, :H]
    adj_recovered = rec_p[:N, :F]
    return adj_recovered, [hidden]


if __name__ == "__main__":
    # Small, deterministic problem: N nodes, F input features, H hidden dims.
    N, F_DIM, H_DIM = 64, 32, 16
    key = jax.random.PRNGKey(0)
    kx, ka, kw = jax.random.split(key, 3)

    x = jax.random.normal(kx, (N, F_DIM), dtype=jnp.float32)
    # Symmetric dense "adjacency" (values only matter for the matmul path).
    a_raw = jax.random.uniform(ka, (N, N), dtype=jnp.float32)
    adj = (a_raw + a_raw.T) * 0.5
    # Deterministic glorot-like init for gc1.weight (shape (F, H)).
    weight = jax.random.normal(kw, (F_DIM, H_DIM), dtype=jnp.float32) * (
        1.0 / jnp.sqrt(F_DIM)
    )

    adj_rec, (hidden,) = gcn_modified_ae_forward(x, adj, weight)
    adj_rec = jax.block_until_ready(adj_rec)
    hidden = jax.block_until_ready(hidden)

    # bf16-faithful reference: the kernels stream bf16 operands but accumulate
    # in f32 on the MXU, so mimic the per-stage bf16 rounding here.
    f32, bf16 = jnp.float32, jnp.bfloat16
    xb = x.astype(bf16).astype(f32)
    ab = adj.astype(bf16).astype(f32)
    wb = weight.astype(bf16).astype(f32)
    wtb = weight.T.astype(bf16).astype(f32)
    support_ref = jnp.dot(xb, wb, precision=lax.Precision.HIGHEST)
    support_ref = support_ref.astype(bf16).astype(f32)          # kernel A emits bf16
    hidden_ref = jnp.dot(ab, support_ref, precision=lax.Precision.HIGHEST)
    adj_rec_ref = jnp.dot(hidden_ref.astype(bf16).astype(f32), wtb,
                          precision=lax.Precision.HIGHEST)

    assert adj_rec.shape == (N, F_DIM) and hidden.shape == (N, H_DIM)
    assert jnp.allclose(hidden, hidden_ref, atol=2e-2, rtol=2e-2)
    assert jnp.allclose(adj_rec, adj_rec_ref, atol=2e-2, rtol=2e-2)

    print("KERNEL_OK")
</pallas_src>

<mosaic_0001>
module attributes {stable_mosaic.version = 11 : i64} {
  func.func @_fused_gcn_kernel(%arg0: i32, %arg1: i32, %arg2: memref<64x128xbf16, #tpu.memory_space<vmem>>, %arg3: memref<128x128xbf16, #tpu.memory_space<vmem>>, %arg4: memref<128x128xbf16, #tpu.memory_space<vmem>>, %arg5: memref<64x128xf32, #tpu.memory_space<vmem>>, %arg6: memref<64x128xf32, #tpu.memory_space<vmem>>) attributes {dimension_semantics = [#tpu.dimension_semantics<parallel>, #tpu.dimension_semantics<arbitrary>], iteration_bounds = array<i64: 2, 1>, scalar_prefetch = 0 : i64, scratch_operands = 0 : i64, tpu.core_type = #tpu.core_type<tc>, window_params = [{transform_indices = @transform_0, window_bounds = array<i64: 64, 128>}, {pipeline_mode = #tpu.pipeline_mode<synchronous>, transform_indices = @transform_1, window_bounds = array<i64: 128, 128>}, {pipeline_mode = #tpu.pipeline_mode<synchronous>, transform_indices = @transform_2, window_bounds = array<i64: 128, 128>}, {transform_indices = @transform_3, window_bounds = array<i64: 64, 128>}, {transform_indices = @transform_4, window_bounds = array<i64: 64, 128>}]} {
    %c0_i32 = arith.constant 0 : i32
    %0 = arith.cmpi eq, %arg1, %c0_i32 : i32
    %1 = arith.extui %0 : i1 to i32
    %c0_i32_0 = arith.constant 0 : i32
    %2 = arith.cmpi ne, %1, %c0_i32_0 : i32
    scf.if %2 {
      %cst_9 = arith.constant 0.000000e+00 : f32
      %15 = vector.broadcast %cst_9 : f32 to vector<64x128xf32>
      %c0_10 = arith.constant 0 : index
      %c0_11 = arith.constant 0 : index
      %16 = vector.load %arg5[%c0_10, %c0_11] : memref<64x128xf32, #tpu.memory_space<vmem>>, vector<64x128xf32>
      tpu.vector_store %arg5[%c0_10, %c0_11], %15 {strides = array<i32>} : memref<64x128xf32, #tpu.memory_space<vmem>>, vector<64x128xf32>,
    } else {
    }
    %c128_i32 = arith.constant 128 : i32
    %3 = arith.muli %arg1, %c128_i32 : i32
    %4 = tpu.assume_multiple %3, 128 : i32
    %5 = arith.index_cast %4 : i32 to index
    %c0 = arith.constant 0 : index
    %6 = vector.load %arg3[%5, %c0] : memref<128x128xbf16, #tpu.memory_space<vmem>>, vector<128x128xbf16>
    %c0_1 = arith.constant 0 : index
    %c0_2 = arith.constant 0 : index
    %7 = vector.load %arg5[%c0_1, %c0_2] : memref<64x128xf32, #tpu.memory_space<vmem>>, vector<64x128xf32>
    %c0_3 = arith.constant 0 : index
    %c0_4 = arith.constant 0 : index
    %8 = vector.load %arg2[%c0_3, %c0_4] : memref<64x128xbf16, #tpu.memory_space<vmem>>, vector<64x128xbf16>
    %cst = arith.constant dense<0.000000e+00> : vector<64x128xf32>
    %9 = tpu.matmul %8, %6, %cst {dimension_numbers = #tpu.dot_dimension_numbers<[1], [0], [0], [1], [0, 0, 1, 1], [], []>} : vector<64x128xbf16>, vector<128x128xbf16>, vector<64x128xf32> -> vector<64x128xf32>
    %10 = arith.addf %7, %9 : vector<64x128xf32>
    %c0_5 = arith.constant 0 : index
    %c0_6 = arith.constant 0 : index
    %11 = vector.load %arg5[%c0_5, %c0_6] : memref<64x128xf32, #tpu.memory_space<vmem>>, vector<64x128xf32>
    tpu.vector_store %arg5[%c0_5, %c0_6], %10 {strides = array<i32>} : memref<64x128xf32, #tpu.memory_space<vmem>>, vector<64x128xf32>,
    %c0_i32_7 = arith.constant 0 : i32
    %12 = arith.cmpi eq, %arg1, %c0_i32_7 : i32
    %13 = arith.extui %12 : i1 to i32
    %c0_i32_8 = arith.constant 0 : i32
    %14 = arith.cmpi ne, %13, %c0_i32_8 : i32
    scf.if %14 {
      %c0_9 = arith.constant 0 : index
      %c0_10 = arith.constant 0 : index
      %15 = vector.load %arg5[%c0_9, %c0_10] : memref<64x128xf32, #tpu.memory_space<vmem>>, vector<64x128xf32>
      %16 = arith.truncf %15 : vector<64x128xf32> to vector<64x128xbf16>
      %c0_11 = arith.constant 0 : index
      %c0_12 = arith.constant 0 : index
      %17 = vector.load %arg4[%c0_11, %c0_12] : memref<128x128xbf16, #tpu.memory_space<vmem>>, vector<128x128xbf16>
      %cst_13 = arith.constant dense<0.000000e+00> : vector<64x128xf32>
      %18 = tpu.matmul %16, %17, %cst_13 {dimension_numbers = #tpu.dot_dimension_numbers<[1], [0], [0], [1], [0, 0, 1, 1], [], []>} : vector<64x128xbf16>, vector<128x128xbf16>, vector<64x128xf32> -> vector<64x128xf32>
      %c0_14 = arith.constant 0 : index
      %c0_15 = arith.constant 0 : index
      %19 = vector.load %arg6[%c0_14, %c0_15] : memref<64x128xf32, #tpu.memory_space<vmem>>, vector<64x128xf32>
      tpu.vector_store %arg6[%c0_14, %c0_15], %18 {strides = array<i32>} : memref<64x128xf32, #tpu.memory_space<vmem>>, vector<64x128xf32>,
    } else {
    }
    return
  }
  func.func @transform_0(%arg0: i32, %arg1: i32) -> (i32, i32) {
    %c0_i32 = arith.constant 0 : i32
    return %arg0, %arg1 : i32, i32
  }
  func.func @transform_1(%arg0: i32, %arg1: i32) -> (i32, i32) {
    %c0_i32 = arith.constant 0 : i32
    %c0_i32_0 = arith.constant 0 : i32
    %c0_i32_1 = arith.constant 0 : i32
    return %c0_i32, %c0_i32_0 : i32, i32
  }
  func.func @transform_2(%arg0: i32, %arg1: i32) -> (i32, i32) {
    %c0_i32 = arith.constant 0 : i32
    %c0_i32_0 = arith.constant 0 : i32
    %c0_i32_1 = arith.constant 0 : i32
    return %c0_i32, %c0_i32_0 : i32, i32
  }
  func.func @transform_3(%arg0: i32, %arg1: i32) -> (i32, i32) {
    %c0_i32 = arith.constant 0 : i32
    %c0_i32_0 = arith.constant 0 : i32
    return %arg0, %c0_i32 : i32, i32
  }
  func.func @transform_4(%arg0: i32, %arg1: i32) -> (i32, i32) {
    %c0_i32 = arith.constant 0 : i32
    %c0_i32_0 = arith.constant 0 : i32
    return %arg0, %c0_i32 : i32, i32
  }
}

module attributes {stable_mosaic.version = 11 : i64} {
  func.func @_support_kernel(%arg0: i32, %arg1: memref<64x128xbf16, #tpu.memory_space<vmem>>, %arg2: memref<128x128xbf16, #tpu.memory_space<vmem>>, %arg3: memref<64x128xbf16, #tpu.memory_space<vmem>>) attributes {dimension_semantics = [#tpu.dimension_semantics<parallel>], iteration_bounds = array<i64: 2>, scalar_prefetch = 0 : i64, scratch_operands = 0 : i64, tpu.core_type = #tpu.core_type<tc>, window_params = [{transform_indices = @transform_0, window_bounds = array<i64: 64, 128>}, {pipeline_mode = #tpu.pipeline_mode<synchronous>, transform_indices = @transform_1, window_bounds = array<i64: 128, 128>}, {transform_indices = @transform_2, window_bounds = array<i64: 64, 128>}]} {
    %c0 = arith.constant 0 : index
    %c0_0 = arith.constant 0 : index
    %0 = vector.load %arg1[%c0, %c0_0] : memref<64x128xbf16, #tpu.memory_space<vmem>>, vector<64x128xbf16>
    %c0_1 = arith.constant 0 : index
    %c0_2 = arith.constant 0 : index
    %1 = vector.load %arg2[%c0_1, %c0_2] : memref<128x128xbf16, #tpu.memory_space<vmem>>, vector<128x128xbf16>
    %cst = arith.constant dense<0.000000e+00> : vector<64x128xf32>
    %2 = tpu.matmul %0, %1, %cst {dimension_numbers = #tpu.dot_dimension_numbers<[1], [0], [0], [1], [0, 0, 1, 1], [], []>} : vector<64x128xbf16>, vector<128x128xbf16>, vector<64x128xf32> -> vector<64x128xf32>
    %3 = arith.truncf %2 : vector<64x128xf32> to vector<64x128xbf16>
    %c0_3 = arith.constant 0 : index
    %c0_4 = arith.constant 0 : index
    %4 = vector.load %arg3[%c0_3, %c0_4] : memref<64x128xbf16, #tpu.memory_space<vmem>>, vector<64x128xbf16>
    tpu.vector_store %arg3[%c0_3, %c0_4], %3 {strides = array<i32>} : memref<64x128xbf16, #tpu.memory_space<vmem>>, vector<64x128xbf16>,
    return
  }
  func.func @transform_0(%arg0: i32) -> (i32, i32) {
    %c0_i32 = arith.constant 0 : i32
    %c0_i32_0 = arith.constant 0 : i32
    return %arg0, %c0_i32 : i32, i32
  }
  func.func @transform_1(%arg0: i32) -> (i32, i32) {
    %c0_i32 = arith.constant 0 : i32
    %c0_i32_0 = arith.constant 0 : i32
    %c0_i32_1 = arith.constant 0 : i32
    return %c0_i32, %c0_i32_0 : i32, i32
  }
  func.func @transform_2(%arg0: i32) -> (i32, i32) {
    %c0_i32 = arith.constant 0 : i32
    %c0_i32_0 = arith.constant 0 : i32
    return %arg0, %c0_i32 : i32, i32
  }
}

</mosaic_0001>

<bundles_post_ra>
// kernel: gcn_modified_ae_forward.3
= control target key start
LH: loop header
LB: loop body
LE: loop exit
PB: predicated region body
PF: predicated region fallthrough
CT: control target
= control target key end

     0   :  { %s896_s15 = smov 0   ;;  %s898_s16 = smov 0   ;;  %s990_s0 = inlined_call_operand.vmem [shape: bf16[128,128], index: 0, kind: input, shape index: {}]   ;;  %s991_s1 = inlined_call_operand.vmem [shape: bf16[128,128], index: 1, kind: input, shape index: {}]   ;;  %s992_s2 = inlined_call_operand.vmem [shape: bf16[128,128], index: 2, kind: input, shape index: {}]   ;;  %s993_s3 = inlined_call_operand.vmem [shape: f32[128,128], index: 3, kind: output, shape index: {0}]   ;;  %s994_s4 = inlined_call_operand.vmem [shape: f32[128,128], index: 4, kind: output, shape index: {1}]  }
   0x1   :  { %s900_s17 = smov 0  }
   0x2 LB: > { %s27_s18 = sadd.s32 1, %s865_s16  ;;  %p701_p0 = scmp.ge.s32.totalorder %s869_s17, 1  ;;  %s869_s17 = sphi %s900_s17, %s15_s17   ;;  %s865_s16 = sphi %s898_s16, %s996_s16   ;;  %s861_s15 = sphi %s896_s15, %s995_s15  }
   0x3   : > { %p29_p1 = scmp.ge.s32.totalorder %s27_s18, 2  ;;  %p183_p2 = scmp.lt.s32.totalorder %s869_s17, 3 }
   0x5   : > { %s998_s18 = smov (%p29_p1, %s27_s18), 0  ;;  %p184_p3 = pnand %p701_p0, %p183_p2 }
   0x6   : > { %v827_v0 = vld [vmem:[%s991_s1] sm:$0xff] (!%p184_p3)   ;;  %s702_s21 = sshll.u32 (!%p184_p3), %s861_s15, 3  ;;  %v828_v1 = vld [vmem:[%s991_s1 + $0x8] sm:$0xff] (!%p184_p3)   ;;  %v829_v2 = vld [vmem:[%s991_s1 + $0x10] sm:$0xff] (!%p184_p3)  }
   0x7   : > { %187 = sbr.rel (%p184_p3) target bundleno = 481 (0x1e1), region = 32  ;;  %p218_p4 = scmp.lt.s32.totalorder (!%p184_p3), %s702_s21, 15  ;;  %754 = vmatprep.subr.bf16.mxu0 (!%p184_p3), %v827_v0  ;;  %v830_v3 = vld [vmem:[%s991_s1 + $0x18] sm:$0xff] (!%p184_p3)   ;;  %v831_v5 = vld [vmem:[%s991_s1 + $0x20] sm:$0xff] (!%p184_p3)   ;;  %v840_v7 = vld [vmem:[%s992_s2 + $0x8] sm:$0xff] (!%p184_p3)  }
   0x8   : > { %755 = vmatpush3.bf16.msra.mxu0 (!%p184_p3), %v827_v0  ;;  %v839_v6 = vld [vmem:[%s992_s2] sm:$0xff] (!%p184_p3)   ;;  %v832_v8 = vld [vmem:[%s991_s1 + $0x28] sm:$0xff] (!%p184_p3)   ;;  %v841_v9 = vld [vmem:[%s992_s2 + $0x10] sm:$0xff] (!%p184_p3)  }
   0x9   : > { %756 = vmatprep.subr.bf16.mxu0 (!%p184_p3), %v828_v1  ;;  %778 = vmatprep.subr.bf16.mxu1 (!%p184_p3), %v839_v6  ;;  %v833_v10 = vld [vmem:[%s991_s1 + $0x30] sm:$0xff] (!%p184_p3)   ;;  %v842_v11 = vld [vmem:[%s992_s2 + $0x18] sm:$0xff] (!%p184_p3)   ;;  %v843_v16 = vld [vmem:[%s992_s2 + $0x20] sm:$0xff] (!%p184_p3)  }
   0xa   : > { %779 = vmatpush3.bf16.msra.mxu1 (!%p184_p3), %v839_v6  ;;  %v834_v12 = vld [vmem:[%s991_s1 + $0x38] sm:$0xff] (!%p184_p3)   ;;  %v844_v17 = vld [vmem:[%s992_s2 + $0x28] sm:$0xff] (!%p184_p3)   ;;  %v845_v18 = vld [vmem:[%s992_s2 + $0x30] sm:$0xff] (!%p184_p3)  }
   0xb   : > { %780 = vmatprep.subr.bf16.mxu1 (!%p184_p3), %v840_v7  ;;  %v846_v19 = vld [vmem:[%s992_s2 + $0x38] sm:$0xff] (!%p184_p3)  }
   0xc   : > { %757 = vmatpush3.bf16.msra.mxu0 (!%p184_p3), %v828_v1 }
   0xd   : > { %758 = vmatprep.subr.bf16.mxu0 (!%p184_p3), %v829_v2 }
   0xe   : > { %s1000_s21 = smov (!%p218_p4, %s702_s21), 15  ;;  %781 = vmatpush3.bf16.msra.mxu1 %v840_v7 }
   0xf   : > { %s703_s26 = sshll.u32 %s1000_s21, 2  ;;  %782 = vmatprep.subr.bf16.mxu1 %v841_v9  ;;  %s705_s8 = sshll.u32 %s1000_s21, 3 }
  0x10   : > { %s929_s29 = scalar_lea.vmem %s990_s0, %s703_s26  ;;  %759 = vmatpush3.bf16.msra.mxu0 %v829_v2  ;;  %s230_s11 = scalar_lea.vmem %s993_s3, %s705_s8 }
  0x11   : > { %v835_v4 = vld [vmem:[%s929_s29] sm:$0xff]   ;;  %760 = vmatprep.subr.bf16.mxu0 %v830_v3  ;;  %v836_v13 = vld [vmem:[%s929_s29 + $0x8] sm:$0xff]   ;;  %v837_v14 = vld [vmem:[%s929_s29 + $0x10] sm:$0xff]   ;;  %s236_s13 = scalar_lea.vmem %s994_s4, %s705_s8 }
  0x12   : > { %770 = vmatprep.mubr.bf16.mxu0 %v835_v4  ;;  %783 = vmatpush3.bf16.msra.mxu1 %v841_v9  ;;  %v838_v15 = vld [vmem:[%s929_s29 + $0x18] sm:$0xff]  }
  0x13   : > { %784 = vmatprep.subr.bf16.mxu1 %v842_v11 }
  0x14   : > { %761 = vmatpush3.bf16.msra.mxu0 %v830_v3 }
  0x15   : > { %762 = vmatprep.subr.bf16.mxu0 %v831_v5 }
  0x16   : > { %785 = vmatpush3.bf16.msra.mxu1 %v842_v11 }
  0x17   : > { %786 = vmatprep.subr.bf16.mxu1 %v843_v16 }
  0x18   : > { %763 = vmatpush3.bf16.msra.mxu0 %v831_v5 }
  0x19   : > { %764 = vmatprep.subr.bf16.mxu0 %v832_v8 }
  0x1a   : > { %787 = vmatpush3.bf16.msra.mxu1 %v843_v16 }
  0x1b   : > { %788 = vmatprep.subr.bf16.mxu1 %v844_v17 }
  0x1c   : > { %765 = vmatpush3.bf16.msra.mxu0 %v832_v8 }
  0x1d   : > { %766 = vmatprep.subr.bf16.mxu0 %v833_v10 }
  0x1e   : > { %789 = vmatpush3.bf16.msra.mxu1 %v844_v17 }
  0x1f   : > { %790 = vmatprep.subr.bf16.mxu1 %v845_v18 }
  0x20   : > { %767 = vmatpush3.bf16.msra.mxu0 %v833_v10 }
  0x21   : > { %768 = vmatprep.subr.bf16.mxu0 %v834_v12 }
  0x22   : > { %791 = vmatpush3.bf16.msra.mxu1 %v845_v18 }
  0x23   : > { %792 = vmatprep.subr.bf16.mxu1 %v846_v19 }
  0x24   : > { %769 = vmatpush3.bf16.msra.mxu0 %v834_v12 }
  0x26   : > { %793 = vmatpush3.bf16.msra.mxu1 %v846_v19 }
  0x27   : > { %771 = vmatmul.mubr.bf16.vlgmr.msra.gmra.mrb[0].mxu0 %v836_v13 }
  0x28   : > { %774 = vmatprep.mubr.bf16.mxu0 %v837_v14 }
  0x2f   : > { %775 = vmatmul.mubr.bf16.gmra.mrb[4].mxu0 %v838_v15 }
  0xfa   : > { %v772_v20 = vpop.f32.mrb[0].mxu0 }
  0xfb   : > { %v394_v21 = vpop.f32.mrb[1].mxu0  ;;  %435 = vst [vmem:[%s230_s11 + $0x10] sm:$0xff] %v772_v20 }
  0xfc   : > { %v773_v22 = vpop.f32.mrb[2].mxu0  ;;  %433 = vst [vmem:[%s230_s11] sm:$0xff] %v394_v21 }
  0xfd   : > { %v397_v23 = vpop.f32.mrb[3].mxu0  ;;  %436 = vst [vmem:[%s230_s11 + $0x18] sm:$0xff] %v773_v22  ;;  %v453_v24 = vpack.c.bf16 %v773_v22, %v772_v20 }
  0xfe   : > { %434 = vst [vmem:[%s230_s11 + $0x8] sm:$0xff] %v397_v23  ;;  %v452_v25 = vpack.c.bf16 %v397_v23, %v394_v21 }
 0x100   : > { %794 = vmatprep.mubr.bf16.mxu1 %v452_v25 }
 0x101   : > { %795 = vmatmul.mubr.bf16.vlgmr.msra.gmra.mrb[0].mxu1 %v453_v24 }
 0x102   : > { %v776_v26 = vpop.f32.mrb[4].mxu0 }
 0x103   : > { %v410_v27 = vpop.f32.mrb[5].mxu0  ;;  %439 = vst [vmem:[%s230_s11 + $0x30] sm:$0xff] %v776_v26 }
 0x104   : > { %v777_v28 = vpop.f32.mrb[6].mxu0  ;;  %437 = vst [vmem:[%s230_s11 + $0x20] sm:$0xff] %v410_v27 }
 0x105   : > { %v413_v29 = vpop.f32.mrb[7].mxu0  ;;  %440 = vst [vmem:[%s230_s11 + $0x38] sm:$0xff] %v777_v28  ;;  %v455_v30 = vpack.c.bf16 %v777_v28, %v776_v26 }
 0x106   : > { %438 = vst [vmem:[%s230_s11 + $0x28] sm:$0xff] %v413_v29  ;;  %v454_v31 = vpack.c.bf16 %v413_v29, %v410_v27 }
 0x108   : > { %798 = vmatprep.mubr.bf16.mxu1 %v454_v31 }
 0x109   : > { %799 = vmatmul.mubr.bf16.gmra.mrb[4].mxu1 %v455_v30 }
 0x1d4   : > { %v796_v32 = vpop.f32.mrb[0].mxu1 }
 0x1d5   : > { %587 = vst [vmem:[%s236_s13 + $0x10] sm:$0xff] %v796_v32  ;;  %v554_v33 = vpop.f32.mrb[1].mxu1 }
 0x1d6   : > { %585 = vst [vmem:[%s236_s13] sm:$0xff] %v554_v33  ;;  %v797_v34 = vpop.f32.mrb[2].mxu1 }
 0x1d7   : > { %588 = vst [vmem:[%s236_s13 + $0x18] sm:$0xff] %v797_v34  ;;  %v557_v35 = vpop.f32.mrb[3].mxu1 }
 0x1d8   : > { %586 = vst [vmem:[%s236_s13 + $0x8] sm:$0xff] %v557_v35 }
 0x1dc   : > { %v800_v36 = vpop.f32.mrb[4].mxu1 }
 0x1dd   : > { %591 = vst [vmem:[%s236_s13 + $0x30] sm:$0xff] %v800_v36  ;;  %v570_v37 = vpop.f32.mrb[5].mxu1 }
 0x1de   : > { %589 = vst [vmem:[%s236_s13 + $0x20] sm:$0xff] %v570_v37  ;;  %v801_v38 = vpop.f32.mrb[6].mxu1 }
 0x1df   : > { %592 = vst [vmem:[%s236_s13 + $0x38] sm:$0xff] %v801_v38  ;;  %v573_v39 = vpop.f32.mrb[7].mxu1 }
 0x1e0   : > { %590 = vst [vmem:[%s236_s13 + $0x28] sm:$0xff] %v573_v39 }
 0x1e1 PF: > { %s15_s17 = sadd.s32 1, %s869_s17   ;;  %s995_s15 = smov %s865_s16 }
 0x1e2   : > { %p12_p5 = scmp.ge.s32.totalorder %s15_s17, 4   ;;  %s996_s16 = smov %s998_s18 }
 0x1e4   :  { %14 = sbr.rel (!%p12_p5) target bundleno = 2 (0x2), region = 83 }

// kernel: gcn_modified_ae_forward.2
= control target key start
LH: loop header
LB: loop body
LE: loop exit
PB: predicated region body
PF: predicated region fallthrough
CT: control target
= control target key end

     0   :  { %s562_s9 = smov 0   ;;  %s616_s0 = inlined_call_operand.vmem [shape: bf16[128,128], index: 0, kind: input, shape index: {}]   ;;  %s617_s1 = inlined_call_operand.vmem [shape: bf16[128,128], index: 1, kind: input, shape index: {}]   ;;  %s618_s2 = inlined_call_operand.vmem [shape: bf16[128,128], index: 2, kind: output, shape index: {}]  }
   0x1 LB: > { %s405_s10 = sadd.s32 4294967295, %s545_s9   ;;  %p409_p0 = scmp.ge.s32.totalorder %s545_s9, 1  ;;  %s545_s9 = sphi %s562_s9, %s12_s9  }
   0x2   : > { %p113_p1 = scmp.lt.s32.totalorder %s545_s9, 3 }
   0x4   : > { %p114_p2 = pnand %p409_p0, %p113_p1 }
   0x5   : > { %v527_v0 = vld [vmem:[%s617_s1] sm:$0xff] (!%p114_p2)   ;;  %s410_s13 = sshll.u32 (!%p114_p2), %s405_s10, 3  ;;  %v528_v1 = vld [vmem:[%s617_s1 + $0x8] sm:$0xff] (!%p114_p2)   ;;  %v529_v2 = vld [vmem:[%s617_s1 + $0x10] sm:$0xff] (!%p114_p2)  }
   0x6   : > { %117 = sbr.rel (%p114_p2) target bundleno = 256 (0x100), region = 28  ;;  %p136_p3 = scmp.lt.s32.totalorder (!%p114_p2), %s410_s13, 15  ;;  %479 = vmatprep.subr.bf16.mxu0 (!%p114_p2), %v527_v0  ;;  %503 = vmatprep.subr.bf16.mxu1 (!%p114_p2), %v527_v0  ;;  %v530_v3 = vld [vmem:[%s617_s1 + $0x18] sm:$0xff] (!%p114_p2)   ;;  %v531_v6 = vld [vmem:[%s617_s1 + $0x20] sm:$0xff] (!%p114_p2)   ;;  %v532_v7 = vld [vmem:[%s617_s1 + $0x28] sm:$0xff] (!%p114_p2)  }
   0x7   : > { %480 = vmatpush3.bf16.msra.mxu0 (!%p114_p2), %v527_v0  ;;  %511 = vmatpush3.bf16.msra.mxu1 (!%p114_p2), %v527_v0  ;;  %v533_v8 = vld [vmem:[%s617_s1 + $0x30] sm:$0xff] (!%p114_p2)   ;;  %v534_v9 = vld [vmem:[%s617_s1 + $0x38] sm:$0xff] (!%p114_p2)  }
   0x8   : > { %481 = vmatprep.subr.bf16.mxu0 (!%p114_p2), %v528_v1  ;;  %504 = vmatprep.subr.bf16.mxu1 (!%p114_p2), %v528_v1 }
   0xb   : > { %482 = vmatpush3.bf16.msra.mxu0 (!%p114_p2), %v528_v1  ;;  %512 = vmatpush3.bf16.msra.mxu1 (!%p114_p2), %v528_v1 }
   0xc   : > { %483 = vmatprep.subr.bf16.mxu0 (!%p114_p2), %v529_v2  ;;  %505 = vmatprep.subr.bf16.mxu1 (!%p114_p2), %v529_v2 }
   0xd   : > { %s620_s13 = smov (!%p136_p3, %s410_s13), 15 }
   0xe   : > { %s411_s18 = sshll.u32 %s620_s13, 2 }
   0xf   : > { %s587_s21 = scalar_lea.vmem %s616_s0, %s411_s18  ;;  %484 = vmatpush3.bf16.msra.mxu0 %v529_v2  ;;  %513 = vmatpush3.bf16.msra.mxu1 %v529_v2  ;;  %s145_s6 = scalar_lea.vmem %s618_s2, %s411_s18 }
  0x10   : > { %v535_v4 = vld [vmem:[%s587_s21] sm:$0xff]   ;;  %v536_v5 = vld [vmem:[%s587_s21 + $0x10] sm:$0xff]   ;;  %485 = vmatprep.subr.bf16.mxu0 %v530_v3  ;;  %506 = vmatprep.subr.bf16.mxu1 %v530_v3  ;;  %v537_v10 = vld [vmem:[%s587_s21 + $0x8] sm:$0xff]  }
  0x11   : > { %495 = vmatprep.mubr.bf16.mxu0 %v535_v4  ;;  %499 = vmatprep.mubr.bf16.mxu1 %v536_v5  ;;  %v538_v11 = vld [vmem:[%s587_s21 + $0x18] sm:$0xff]  }
  0x13   : > { %486 = vmatpush3.bf16.msra.mxu0 %v530_v3  ;;  %514 = vmatpush3.bf16.msra.mxu1 %v530_v3 }
  0x14   : > { %487 = vmatprep.subr.bf16.mxu0 %v531_v6  ;;  %507 = vmatprep.subr.bf16.mxu1 %v531_v6 }
  0x17   : > { %488 = vmatpush3.bf16.msra.mxu0 %v531_v6  ;;  %515 = vmatpush3.bf16.msra.mxu1 %v531_v6 }
  0x18   : > { %489 = vmatprep.subr.bf16.mxu0 %v532_v7  ;;  %508 = vmatprep.subr.bf16.mxu1 %v532_v7 }
  0x1b   : > { %490 = vmatpush3.bf16.msra.mxu0 %v532_v7  ;;  %516 = vmatpush3.bf16.msra.mxu1 %v532_v7 }
  0x1c   : > { %491 = vmatprep.subr.bf16.mxu0 %v533_v8  ;;  %509 = vmatprep.subr.bf16.mxu1 %v533_v8 }
  0x1f   : > { %492 = vmatpush3.bf16.msra.mxu0 %v533_v8  ;;  %517 = vmatpush3.bf16.msra.mxu1 %v533_v8 }
  0x20   : > { %493 = vmatprep.subr.bf16.mxu0 %v534_v9  ;;  %510 = vmatprep.subr.bf16.mxu1 %v534_v9 }
  0x23   : > { %494 = vmatpush3.bf16.msra.mxu0 %v534_v9  ;;  %518 = vmatpush3.bf16.msra.mxu1 %v534_v9 }
  0x26   : > { %496 = vmatmul.mubr.bf16.vlgmr.msra.gmra.mrb[0].mxu0 %v537_v10  ;;  %500 = vmatmul.mubr.bf16.vlgmr.msra.gmra.mrb[0].mxu1 %v538_v11 }
  0xf9   : > { %v497_v12 = vpop.f32.mrb[0].mxu0  ;;  %v501_v13 = vpop.f32.mrb[0].mxu1 }
  0xfa   : > { %v278_v14 = vpop.f32.mrb[1].mxu0  ;;  %v294_v15 = vpop.f32.mrb[1].mxu1 }
  0xfb   : > { %v498_v16 = vpop.f32.mrb[2].mxu0  ;;  %v502_v17 = vpop.f32.mrb[2].mxu1 }
  0xfc   : > { %v452_v18 = vpack.c.bf16 %v498_v16, %v497_v12  ;;  %v462_v19 = vpack.c.bf16 %v502_v17, %v501_v13  ;;  %v281_v20 = vpop.f32.mrb[3].mxu0  ;;  %v297_v21 = vpop.f32.mrb[3].mxu1 }
  0xfd   : > { %v447_v22 = vpack.c.bf16 %v281_v20, %v278_v14  ;;  %v457_v23 = vpack.c.bf16 %v297_v21, %v294_v15 }
  0xfe   : > { %464 = vst [vmem:[%s145_s6 + $0x8] sm:$0xff] %v452_v18   ;;  %466 = vst [vmem:[%s145_s6 + $0x18] sm:$0xff] %v462_v19  }
  0xff   : > { %448 = vst [vmem:[%s145_s6] sm:$0xff] %v447_v22   ;;  %465 = vst [vmem:[%s145_s6 + $0x10] sm:$0xff] %v457_v23  }
 0x100 PF: > { %s12_s9 = sadd.s32 1, %s545_s9  }
 0x101   : > { %p9_p4 = scmp.ge.s32.totalorder %s12_s9, 4  }
 0x103   :  { %11 = sbr.rel (!%p9_p4) target bundleno = 1 (0x1), region = 58 }

</bundles_post_ra>
